<compile_context>
chip_gen: v6e
topology: v6e:2x2x1
jax: 0.10.0
libtpu: 0.0.40
codegen_flags: <defaults>
</compile_context>

<pallas_src>
import functools
import math

import jax
import jax.numpy as jnp
from jax.experimental import pallas as pl
from jax.experimental.pallas import tpu as pltpu


# ----------------------------------------------------------------------------
# Kernel
# ----------------------------------------------------------------------------
def _gelu_tanh(v):
    c = 0.7978845608028654  # sqrt(2/pi)
    return 0.5 * v * (1.0 + jnp.tanh(c * (v + 0.044715 * (v * v * v))))


def _lka_kernel(x_ref, w1_ref, b1_ref, w2_ref, b2_ref, w3_ref, b3_ref, o_ref,
                *, L, offsets1, offsets2, bb):
    """One grid step = `bb` whole sequences in (C, Lp) layout (C sublanes, L lanes)."""
    f32 = jnp.float32
    _, C, Lp = x_ref.shape
    cdt = x_ref.dtype                       # compute dtype feeding the MXU

    # Per-lane position inside the (padded) sequence; computed once per step.
    l_pos = jax.lax.broadcasted_iota(jnp.int32, (1, Lp), 1)
    # Boundary masks for every distinct non-zero tap offset (computed once).
    tap_masks = {off: (l_pos + off >= 0) & (l_pos + off < L)
                 for off in sorted({o for o in offsets1 + offsets2 if o != 0})}
    # Mask that zeroes the padded tail (only needed if L was padded up).
    seq_mask = (l_pos < L) if Lp > L else None

    def tap_conv(h, w_ref, b_ref, offsets):
        """sum_k W_k^T @ shift(h, off_k), f32 accumulation, + bias."""
        acc = None
        for k, off in enumerate(offsets):
            if off == 0:
                hk = h
            else:
                # Circular lane rotation so that hk[:, l] = h[:, (l+off) mod Lp];
                # positions whose true source l+off falls outside [0, L) are
                # zeroed (matches the implicit zero padding of conv_transpose).
                hk = pltpu.roll(h, shift=(-off) % Lp, axis=1)
                hk = jnp.where(tap_masks[off], hk, jnp.zeros((), cdt))
            part = jnp.dot(w_ref[k], hk, preferred_element_type=f32)
            acc = part if acc is None else acc + part
        return acc + b_ref[...].astype(f32)

    def act(y_f32):
        # GELU polynomial in the compute dtype (bf16 VALU on v6e/v7x when the
        # inputs are bf16); f32 inputs keep the full-precision path.
        h = _gelu_tanh(y_f32.astype(cdt))
        if seq_mask is not None:
            h = jnp.where(seq_mask, h, jnp.zeros((), cdt))
        return h

    def process(bi):
        h = act(tap_conv(x_ref[bi], w1_ref, b1_ref, offsets1))       # conv1 + gelu
        h = act(tap_conv(h, w2_ref, b2_ref, offsets2))                # conv2 + gelu
        y3 = (jnp.dot(w3_ref[...], h, preferred_element_type=f32)
              + b3_ref[...].astype(f32))                              # 1x1 conv
        h3 = _gelu_tanh(y3)                 # stays f32: feeds only the gate
        # Re-read x from its VMEM input buffer for the gate (keeps the x tile
        # out of the register file across the conv/gelu pipeline).
        o_ref[bi] = (h3 * x_ref[bi].astype(f32)).astype(o_ref.dtype)

    if bb == 1:
        process(0)
    else:
        def body(bi, carry):
            process(bi)
            return carry
        jax.lax.fori_loop(0, bb, body, 0, unroll=True)


# ----------------------------------------------------------------------------
# Wrapper
# ----------------------------------------------------------------------------
def _pick_seqs_per_block(B, Cp, Lp, itemsize, K1, K2, budget_bytes):
    """Largest divisor of B that keeps >= min(B,4) grid steps and fits VMEM."""
    weight_bytes = (K1 + K2 + 1) * Cp * Cp * itemsize + 3 * Cp * 4
    min_steps = min(B, 4)                  # >= 2*num_cores on v7x when possible
    best = 1
    for bb in range(1, min(B, 8) + 1):
        if B % bb:
            continue
        if B // bb < min_steps:
            break
        per_step = (4 * bb * Cp * Lp * itemsize   # in + out blocks, double buffered
                    + 2 * weight_bytes            # resident weights (conservative x2)
                    + 8 * Cp * Lp * 4)            # f32 temporaries / spill headroom
        if per_step > budget_bytes:
            break
        best = bb
    return best


def lka_transpose1d(x, params, *, kernel_sizes=(3, 3), dilation=6):
    """Pallas implementation of LKATranspose1d.forward.

    x: (B, C, L).  params = ((w1, b1), (w2, b2), (w3, b3)) with each weight in
    the PyTorch ConvTranspose1d convention (C_in, C_out, K) and bias (C,).
    Returns (B, C, L) == kernel(x) * x.
    """
    (w1, b1), (w2, b2), (w3, b3) = params
    B, C, L = x.shape
    K1, K2 = kernel_sizes
    p1, d1 = K1 // 2, 1
    p2, d2 = dilation * (K2 - 1) // 2, dilation
    assert L + d1 * (K1 - 1) - 2 * p1 == L, "layer-1 conv_transpose must preserve length"
    assert L + d2 * (K2 - 1) - 2 * p2 == L, "layer-2 conv_transpose must preserve length"

    offsets1 = tuple(p1 - d1 * k for k in range(K1))
    offsets2 = tuple(p2 - d2 * k for k in range(K2))

    cdt = x.dtype
    itemsize = jnp.dtype(cdt).itemsize
    sub = max(8, 32 // itemsize)               # native sublane multiple for dtype
    Cp = -(-C // sub) * sub                    # channels -> sublane multiple
    Lp = -(-L // 128) * 128                    # length   -> lane multiple (dense stores)

    # One (cheap / often no-op) zero-pad pass; everything else stays in the
    # original (B, C, L) layout end-to-end.
    x_p = jnp.pad(x, ((0, 0), (0, Cp - C), (0, Lp - L))) if (Cp, Lp) != (C, L) else x

    def prep_taps(w, K):
        wt = jnp.transpose(w, (2, 1, 0)).astype(cdt)       # (K, Cout, Cin)
        if Cp != C:
            wt = jnp.pad(wt, ((0, 0), (0, Cp - C), (0, Cp - C)))
        return wt

    def prep_bias(b):
        bp = b.astype(jnp.float32).reshape(C, 1)            # biases kept f32
        if Cp != C:
            bp = jnp.pad(bp, ((0, Cp - C), (0, 0)))
        return bp

    w1t, w2t = prep_taps(w1, K1), prep_taps(w2, K2)
    w3t = prep_taps(w3, 1)[0]                                # 1x1 conv -> (Cout, Cin)
    b1p, b2p, b3p = prep_bias(b1), prep_bias(b2), prep_bias(b3)

    # Generation-aware VMEM budget (v7x has only 64 MiB physical per core).
    try:
        vmem_cap = pltpu.get_tpu_info().vmem_capacity_bytes
    except Exception:
        vmem_cap = 64 * 1024 * 1024
    vmem_limit = min(vmem_cap // 2, 64 * 1024 * 1024)        # 32 MiB v7x / 64 MiB v5e,v6e
    budget = vmem_limit * 2 // 3

    bb = _pick_seqs_per_block(B, Cp, Lp, itemsize, K1, K2, budget)
    grid = (B // bb,)

    kernel = functools.partial(_lka_kernel, L=L, offsets1=offsets1,
                               offsets2=offsets2, bb=bb)

    out_p = pl.pallas_call(
        kernel,
        out_shape=jax.ShapeDtypeStruct((B, Cp, Lp), cdt),
        grid_spec=pltpu.PrefetchScalarGridSpec(
            num_scalar_prefetch=0,
            grid=grid,
            in_specs=[
                pl.BlockSpec((bb, Cp, Lp), lambda i: (i, 0, 0)),    # x block (native layout)
                pl.BlockSpec((K1, Cp, Cp), lambda i: (0, 0, 0)),    # w1 taps (resident)
                pl.BlockSpec((Cp, 1), lambda i: (0, 0)),            # b1
                pl.BlockSpec((K2, Cp, Cp), lambda i: (0, 0, 0)),    # w2 taps (resident)
                pl.BlockSpec((Cp, 1), lambda i: (0, 0)),            # b2
                pl.BlockSpec((Cp, Cp), lambda i: (0, 0)),           # w3 (1x1)
                pl.BlockSpec((Cp, 1), lambda i: (0, 0)),            # b3
            ],
            out_specs=pl.BlockSpec((bb, Cp, Lp), lambda i: (i, 0, 0)),
        ),
        compiler_params=pltpu.CompilerParams(
            dimension_semantics=("parallel",),
            vmem_limit_bytes=vmem_limit,
        ),
    )(x_p, w1t, b1p, w2t, b2p, w3t, b3p)

    if (Cp, Lp) != (C, L):
        out_p = out_p[:, :C, :L]
    return out_p


# ----------------------------------------------------------------------------
# Pure-JAX reference (mirrors the PyTorch forward, same GELU approximation)
# ----------------------------------------------------------------------------
def _conv_transpose1d_ref(x, w, b, padding, dilation):
    # x: (B, Cin, L), w: (Cin, Cout, K), b: (Cout,)  -- stride 1.
    B, Cin, L = x.shape
    _, Cout, K = w.shape
    Lout = L + dilation * (K - 1) - 2 * padding
    y = jnp.zeros((B, Cout, Lout), jnp.float32)
    for k in range(K):
        shift = padding - dilation * k
        lo = max(0, -shift)
        hi = min(Lout, L - shift)
        if hi <= lo:
            continue
        xs = x[:, :, lo + shift:hi + shift].astype(jnp.float32)
        contrib = jnp.einsum("bci,co->boi", xs, w[:, :, k].astype(jnp.float32),
                             precision=jax.lax.Precision.HIGHEST)
        y = y.at[:, :, lo:hi].add(contrib)
    return y + b.astype(jnp.float32)[None, :, None]


def lka_transpose1d_ref(x, params, *, kernel_sizes=(3, 3), dilation=6):
    (w1, b1), (w2, b2), (w3, b3) = params
    K1, K2 = kernel_sizes
    h = _gelu_tanh(_conv_transpose1d_ref(x, w1, b1, K1 // 2, 1))
    h = _gelu_tanh(_conv_transpose1d_ref(h, w2, b2, dilation * (K2 - 1) // 2, dilation))
    h = _gelu_tanh(_conv_transpose1d_ref(h, w3, b3, 0, 1))
    return (h * x.astype(jnp.float32)).astype(x.dtype)


# ----------------------------------------------------------------------------
# Test
# ----------------------------------------------------------------------------
if __name__ == "__main__":
    key = jax.random.PRNGKey(0)
    ks = jax.random.split(key, 8)

    B, C, L = 2, 4, 16
    kernel_sizes, dilation = (3, 3), 6

    x = jax.random.normal(ks[0], (B, C, L), dtype=jnp.float32)

    def init_ct(kw, kb, K):
        scale = 1.0 / math.sqrt(C * K)
        w = scale * jax.random.normal(kw, (C, C, K), dtype=jnp.float32)
        b = 0.1 * jax.random.normal(kb, (C,), dtype=jnp.float32)
        return w, b

    params = (init_ct(ks[1], ks[2], kernel_sizes[0]),
              init_ct(ks[3], ks[4], kernel_sizes[1]),
              init_ct(ks[5], ks[6], 1))

    out = lka_transpose1d(x, params, kernel_sizes=kernel_sizes, dilation=dilation)
    out = jax.block_until_ready(out)

    ref = lka_transpose1d_ref(x, params, kernel_sizes=kernel_sizes, dilation=dilation)
    assert out.shape == x.shape
    err = float(jnp.max(jnp.abs(out - ref)))
    assert jnp.allclose(out, ref, atol=2e-3, rtol=2e-3), f"max abs err {err}"
    print("KERNEL_OK")
</pallas_src>

<mosaic_0001>
module attributes {stable_mosaic.version = 11 : i64} {
  func.func @_lka_kernel(%arg0: i32, %arg1: memref<1x8x128xf32, #tpu.memory_space<vmem>>, %arg2: memref<3x8x8xf32, #tpu.memory_space<vmem>>, %arg3: memref<8x1xf32, #tpu.memory_space<vmem>>, %arg4: memref<3x8x8xf32, #tpu.memory_space<vmem>>, %arg5: memref<8x1xf32, #tpu.memory_space<vmem>>, %arg6: memref<8x8xf32, #tpu.memory_space<vmem>>, %arg7: memref<8x1xf32, #tpu.memory_space<vmem>>, %arg8: memref<1x8x128xf32, #tpu.memory_space<vmem>>) attributes {dimension_semantics = [#tpu.dimension_semantics<parallel>], iteration_bounds = array<i64: 2>, scalar_prefetch = 0 : i64, scratch_operands = 0 : i64, tpu.core_type = #tpu.core_type<tc>, window_params = [{transform_indices = @transform_0, window_bounds = array<i64: 1, 8, 128>}, {pipeline_mode = #tpu.pipeline_mode<synchronous>, transform_indices = @transform_1, window_bounds = array<i64: 3, 8, 8>}, {pipeline_mode = #tpu.pipeline_mode<synchronous>, transform_indices = @transform_2, window_bounds = array<i64: 8, 1>}, {pipeline_mode = #tpu.pipeline_mode<synchronous>, transform_indices = @transform_3, window_bounds = array<i64: 3, 8, 8>}, {pipeline_mode = #tpu.pipeline_mode<synchronous>, transform_indices = @transform_4, window_bounds = array<i64: 8, 1>}, {pipeline_mode = #tpu.pipeline_mode<synchronous>, transform_indices = @transform_5, window_bounds = array<i64: 8, 8>}, {pipeline_mode = #tpu.pipeline_mode<synchronous>, transform_indices = @transform_6, window_bounds = array<i64: 8, 1>}, {transform_indices = @transform_7, window_bounds = array<i64: 1, 8, 128>}]} {
    %0 = tpu.iota {dimensions = array<i32: 1>} : vector<1x128xi32>
    %c-6_i32 = arith.constant -6 : i32
    %1 = vector.broadcast %c-6_i32 : i32 to vector<1x128xi32>
    %2 = arith.addi %0, %1 : vector<1x128xi32>
    %c0_i32 = arith.constant 0 : i32
    %3 = vector.broadcast %c0_i32 : i32 to vector<1x128xi32>
    %4 = arith.cmpi sge, %2, %3 : vector<1x128xi32>
    %c-6_i32_0 = arith.constant -6 : i32
    %5 = vector.broadcast %c-6_i32_0 : i32 to vector<1x128xi32>
    %6 = arith.addi %0, %5 : vector<1x128xi32>
    %c16_i32 = arith.constant 16 : i32
    %7 = vector.broadcast %c16_i32 : i32 to vector<1x128xi32>
    %8 = arith.cmpi slt, %6, %7 : vector<1x128xi32>
    %9 = arith.andi %4, %8 : vector<1x128xi1>
    %c-1_i32 = arith.constant -1 : i32
    %10 = vector.broadcast %c-1_i32 : i32 to vector<1x128xi32>
    %11 = arith.addi %0, %10 : vector<1x128xi32>
    %c0_i32_1 = arith.constant 0 : i32
    %12 = vector.broadcast %c0_i32_1 : i32 to vector<1x128xi32>
    %13 = arith.cmpi sge, %11, %12 : vector<1x128xi32>
    %c-1_i32_2 = arith.constant -1 : i32
    %14 = vector.broadcast %c-1_i32_2 : i32 to vector<1x128xi32>
    %15 = arith.addi %0, %14 : vector<1x128xi32>
    %c16_i32_3 = arith.constant 16 : i32
    %16 = vector.broadcast %c16_i32_3 : i32 to vector<1x128xi32>
    %17 = arith.cmpi slt, %15, %16 : vector<1x128xi32>
    %18 = arith.andi %13, %17 : vector<1x128xi1>
    %c1_i32 = arith.constant 1 : i32
    %19 = vector.broadcast %c1_i32 : i32 to vector<1x128xi32>
    %20 = arith.addi %0, %19 : vector<1x128xi32>
    %c0_i32_4 = arith.constant 0 : i32
    %21 = vector.broadcast %c0_i32_4 : i32 to vector<1x128xi32>
    %22 = arith.cmpi sge, %20, %21 : vector<1x128xi32>
    %c1_i32_5 = arith.constant 1 : i32
    %23 = vector.broadcast %c1_i32_5 : i32 to vector<1x128xi32>
    %24 = arith.addi %0, %23 : vector<1x128xi32>
    %c16_i32_6 = arith.constant 16 : i32
    %25 = vector.broadcast %c16_i32_6 : i32 to vector<1x128xi32>
    %26 = arith.cmpi slt, %24, %25 : vector<1x128xi32>
    %27 = arith.andi %22, %26 : vector<1x128xi1>
    %c6_i32 = arith.constant 6 : i32
    %28 = vector.broadcast %c6_i32 : i32 to vector<1x128xi32>
    %29 = arith.addi %0, %28 : vector<1x128xi32>
    %c0_i32_7 = arith.constant 0 : i32
    %30 = vector.broadcast %c0_i32_7 : i32 to vector<1x128xi32>
    %31 = arith.cmpi sge, %29, %30 : vector<1x128xi32>
    %c6_i32_8 = arith.constant 6 : i32
    %32 = vector.broadcast %c6_i32_8 : i32 to vector<1x128xi32>
    %33 = arith.addi %0, %32 : vector<1x128xi32>
    %c16_i32_9 = arith.constant 16 : i32
    %34 = vector.broadcast %c16_i32_9 : i32 to vector<1x128xi32>
    %35 = arith.cmpi slt, %33, %34 : vector<1x128xi32>
    %36 = arith.andi %31, %35 : vector<1x128xi1>
    %c16_i32_10 = arith.constant 16 : i32
    %37 = vector.broadcast %c16_i32_10 : i32 to vector<1x128xi32>
    %38 = arith.cmpi slt, %0, %37 : vector<1x128xi32>
    %c0 = arith.constant 0 : index
    %c0_11 = arith.constant 0 : index
    %c0_12 = arith.constant 0 : index
    %39 = vector.load %arg1[%c0, %c0_11, %c0_12] : memref<1x8x128xf32, #tpu.memory_space<vmem>>, vector<1x8x128xf32>
    %40 = vector.shape_cast %39 : vector<1x8x128xf32> to vector<8x128xf32>
    %c127_i32 = arith.constant 127 : i32
    %41 = tpu.dynamic_rotate %40 by %c127_i32 dim 1 : vector<8x128xf32>, i32 -> vector<8x128xf32>
    %cst = arith.constant 0.000000e+00 : f32
    %42 = vector.shape_cast %27 : vector<1x128xi1> to vector<1x128xi1>
    %43 = vector.broadcast %42 : vector<1x128xi1> to vector<8x128xi1>
    %44 = vector.broadcast %cst : f32 to vector<8x128xf32>
    %45 = arith.select %43, %41, %44 : vector<8x128xi1>, vector<8x128xf32>
    %c0_13 = arith.constant 0 : index
    %c0_14 = arith.constant 0 : index
    %c0_15 = arith.constant 0 : index
    %46 = vector.load %arg2[%c0_13, %c0_14, %c0_15] : memref<3x8x8xf32, #tpu.memory_space<vmem>>, vector<1x8x8xf32>
    %47 = vector.shape_cast %46 : vector<1x8x8xf32> to vector<8x8xf32>
    %cst_16 = arith.constant dense<0.000000e+00> : vector<8x128xf32>
    %48 = tpu.matmul %47, %45, %cst_16 {dimension_numbers = #tpu.dot_dimension_numbers<[1], [0], [0], [1], [0, 0, 1, 1], [], []>} : vector<8x8xf32>, vector<8x128xf32>, vector<8x128xf32> -> vector<8x128xf32>
    %c1 = arith.constant 1 : index
    %c0_17 = arith.constant 0 : index
    %c0_18 = arith.constant 0 : index
    %49 = vector.load %arg2[%c1, %c0_17, %c0_18] : memref<3x8x8xf32, #tpu.memory_space<vmem>>, vector<1x8x8xf32>
    %50 = vector.shape_cast %49 : vector<1x8x8xf32> to vector<8x8xf32>
    %cst_19 = arith.constant dense<0.000000e+00> : vector<8x128xf32>
    %51 = tpu.matmul %50, %40, %cst_19 {dimension_numbers = #tpu.dot_dimension_numbers<[1], [0], [0], [1], [0, 0, 1, 1], [], []>} : vector<8x8xf32>, vector<8x128xf32>, vector<8x128xf32> -> vector<8x128xf32>
    %52 = arith.addf %48, %51 : vector<8x128xf32>
    %c1_i32_20 = arith.constant 1 : i32
    %53 = tpu.dynamic_rotate %40 by %c1_i32_20 dim 1 : vector<8x128xf32>, i32 -> vector<8x128xf32>
    %cst_21 = arith.constant 0.000000e+00 : f32
    %54 = vector.shape_cast %18 : vector<1x128xi1> to vector<1x128xi1>
    %55 = vector.broadcast %54 : vector<1x128xi1> to vector<8x128xi1>
    %56 = vector.broadcast %cst_21 : f32 to vector<8x128xf32>
    %57 = arith.select %55, %53, %56 : vector<8x128xi1>, vector<8x128xf32>
    %c2 = arith.constant 2 : index
    %c0_22 = arith.constant 0 : index
    %c0_23 = arith.constant 0 : index
    %58 = vector.load %arg2[%c2, %c0_22, %c0_23] : memref<3x8x8xf32, #tpu.memory_space<vmem>>, vector<1x8x8xf32>
    %59 = vector.shape_cast %58 : vector<1x8x8xf32> to vector<8x8xf32>
    %cst_24 = arith.constant dense<0.000000e+00> : vector<8x128xf32>
    %60 = tpu.matmul %59, %57, %cst_24 {dimension_numbers = #tpu.dot_dimension_numbers<[1], [0], [0], [1], [0, 0, 1, 1], [], []>} : vector<8x8xf32>, vector<8x128xf32>, vector<8x128xf32> -> vector<8x128xf32>
    %61 = arith.addf %52, %60 : vector<8x128xf32>
    %c0_25 = arith.constant 0 : index
    %c0_26 = arith.constant 0 : index
    %62 = vector.load %arg3[%c0_25, %c0_26] : memref<8x1xf32, #tpu.memory_space<vmem>>, vector<8x1xf32>
    %63 = vector.broadcast %62 : vector<8x1xf32> to vector<8x128xf32>
    %64 = arith.addf %61, %63 : vector<8x128xf32>
    %cst_27 = arith.constant 5.000000e-01 : f32
    %65 = vector.broadcast %cst_27 : f32 to vector<8x128xf32>
    %66 = arith.mulf %65, %64 : vector<8x128xf32>
    %67 = arith.mulf %64, %64 : vector<8x128xf32>
    %68 = arith.mulf %67, %64 : vector<8x128xf32>
    %cst_28 = arith.constant 4.471500e-02 : f32
    %69 = vector.broadcast %cst_28 : f32 to vector<8x128xf32>
    %70 = arith.mulf %69, %68 : vector<8x128xf32>
    %71 = arith.addf %64, %70 : vector<8x128xf32>
    %cst_29 = arith.constant 0.797884583 : f32
    %72 = vector.broadcast %cst_29 : f32 to vector<8x128xf32>
    %73 = arith.mulf %72, %71 : vector<8x128xf32>
    %74 = math.tanh %73 : vector<8x128xf32>
    %cst_30 = arith.constant 1.000000e+00 : f32
    %75 = vector.broadcast %cst_30 : f32 to vector<8x128xf32>
    %76 = arith.addf %75, %74 : vector<8x128xf32>
    %77 = arith.mulf %66, %76 : vector<8x128xf32>
    %cst_31 = arith.constant 0.000000e+00 : f32
    %78 = vector.shape_cast %38 : vector<1x128xi1> to vector<1x128xi1>
    %79 = vector.broadcast %78 : vector<1x128xi1> to vector<8x128xi1>
    %80 = vector.broadcast %cst_31 : f32 to vector<8x128xf32>
    %81 = arith.select %79, %77, %80 : vector<8x128xi1>, vector<8x128xf32>
    %c122_i32 = arith.constant 122 : i32
    %82 = tpu.dynamic_rotate %81 by %c122_i32 dim 1 : vector<8x128xf32>, i32 -> vector<8x128xf32>
    %cst_32 = arith.constant 0.000000e+00 : f32
    %83 = vector.shape_cast %36 : vector<1x128xi1> to vector<1x128xi1>
    %84 = vector.broadcast %83 : vector<1x128xi1> to vector<8x128xi1>
    %85 = vector.broadcast %cst_32 : f32 to vector<8x128xf32>
    %86 = arith.select %84, %82, %85 : vector<8x128xi1>, vector<8x128xf32>
    %c0_33 = arith.constant 0 : index
    %c0_34 = arith.constant 0 : index
    %c0_35 = arith.constant 0 : index
    %87 = vector.load %arg4[%c0_33, %c0_34, %c0_35] : memref<3x8x8xf32, #tpu.memory_space<vmem>>, vector<1x8x8xf32>
    %88 = vector.shape_cast %87 : vector<1x8x8xf32> to vector<8x8xf32>
    %cst_36 = arith.constant dense<0.000000e+00> : vector<8x128xf32>
    %89 = tpu.matmul %88, %86, %cst_36 {dimension_numbers = #tpu.dot_dimension_numbers<[1], [0], [0], [1], [0, 0, 1, 1], [], []>} : vector<8x8xf32>, vector<8x128xf32>, vector<8x128xf32> -> vector<8x128xf32>
    %c1_37 = arith.constant 1 : index
    %c0_38 = arith.constant 0 : index
    %c0_39 = arith.constant 0 : index
    %90 = vector.load %arg4[%c1_37, %c0_38, %c0_39] : memref<3x8x8xf32, #tpu.memory_space<vmem>>, vector<1x8x8xf32>
    %91 = vector.shape_cast %90 : vector<1x8x8xf32> to vector<8x8xf32>
    %cst_40 = arith.constant dense<0.000000e+00> : vector<8x128xf32>
    %92 = tpu.matmul %91, %81, %cst_40 {dimension_numbers = #tpu.dot_dimension_numbers<[1], [0], [0], [1], [0, 0, 1, 1], [], []>} : vector<8x8xf32>, vector<8x128xf32>, vector<8x128xf32> -> vector<8x128xf32>
    %93 = arith.addf %89, %92 : vector<8x128xf32>
    %c6_i32_41 = arith.constant 6 : i32
    %94 = tpu.dynamic_rotate %81 by %c6_i32_41 dim 1 : vector<8x128xf32>, i32 -> vector<8x128xf32>
    %cst_42 = arith.constant 0.000000e+00 : f32
    %95 = vector.shape_cast %9 : vector<1x128xi1> to vector<1x128xi1>
    %96 = vector.broadcast %95 : vector<1x128xi1> to vector<8x128xi1>
    %97 = vector.broadcast %cst_42 : f32 to vector<8x128xf32>
    %98 = arith.select %96, %94, %97 : vector<8x128xi1>, vector<8x128xf32>
    %c2_43 = arith.constant 2 : index
    %c0_44 = arith.constant 0 : index
    %c0_45 = arith.constant 0 : index
    %99 = vector.load %arg4[%c2_43, %c0_44, %c0_45] : memref<3x8x8xf32, #tpu.memory_space<vmem>>, vector<1x8x8xf32>
    %100 = vector.shape_cast %99 : vector<1x8x8xf32> to vector<8x8xf32>
    %cst_46 = arith.constant dense<0.000000e+00> : vector<8x128xf32>
    %101 = tpu.matmul %100, %98, %cst_46 {dimension_numbers = #tpu.dot_dimension_numbers<[1], [0], [0], [1], [0, 0, 1, 1], [], []>} : vector<8x8xf32>, vector<8x128xf32>, vector<8x128xf32> -> vector<8x128xf32>
    %102 = arith.addf %93, %101 : vector<8x128xf32>
    %c0_47 = arith.constant 0 : index
    %c0_48 = arith.constant 0 : index
    %103 = vector.load %arg5[%c0_47, %c0_48] : memref<8x1xf32, #tpu.memory_space<vmem>>, vector<8x1xf32>
    %104 = vector.broadcast %103 : vector<8x1xf32> to vector<8x128xf32>
    %105 = arith.addf %102, %104 : vector<8x128xf32>
    %cst_49 = arith.constant 5.000000e-01 : f32
    %106 = vector.broadcast %cst_49 : f32 to vector<8x128xf32>
    %107 = arith.mulf %106, %105 : vector<8x128xf32>
    %108 = arith.mulf %105, %105 : vector<8x128xf32>
    %109 = arith.mulf %108, %105 : vector<8x128xf32>
    %cst_50 = arith.constant 4.471500e-02 : f32
    %110 = vector.broadcast %cst_50 : f32 to vector<8x128xf32>
    %111 = arith.mulf %110, %109 : vector<8x128xf32>
    %112 = arith.addf %105, %111 : vector<8x128xf32>
    %cst_51 = arith.constant 0.797884583 : f32
    %113 = vector.broadcast %cst_51 : f32 to vector<8x128xf32>
    %114 = arith.mulf %113, %112 : vector<8x128xf32>
    %115 = math.tanh %114 : vector<8x128xf32>
    %cst_52 = arith.constant 1.000000e+00 : f32
    %116 = vector.broadcast %cst_52 : f32 to vector<8x128xf32>
    %117 = arith.addf %116, %115 : vector<8x128xf32>
    %118 = arith.mulf %107, %117 : vector<8x128xf32>
    %cst_53 = arith.constant 0.000000e+00 : f32
    %119 = vector.shape_cast %38 : vector<1x128xi1> to vector<1x128xi1>
    %120 = vector.broadcast %119 : vector<1x128xi1> to vector<8x128xi1>
    %121 = vector.broadcast %cst_53 : f32 to vector<8x128xf32>
    %122 = arith.select %120, %118, %121 : vector<8x128xi1>, vector<8x128xf32>
    %c0_54 = arith.constant 0 : index
    %c0_55 = arith.constant 0 : index
    %123 = vector.load %arg6[%c0_54, %c0_55] : memref<8x8xf32, #tpu.memory_space<vmem>>, vector<8x8xf32>
    %cst_56 = arith.constant dense<0.000000e+00> : vector<8x128xf32>
    %124 = tpu.matmul %123, %122, %cst_56 {dimension_numbers = #tpu.dot_dimension_numbers<[1], [0], [0], [1], [0, 0, 1, 1], [], []>} : vector<8x8xf32>, vector<8x128xf32>, vector<8x128xf32> -> vector<8x128xf32>
    %c0_57 = arith.constant 0 : index
    %c0_58 = arith.constant 0 : index
    %125 = vector.load %arg7[%c0_57, %c0_58] : memref<8x1xf32, #tpu.memory_space<vmem>>, vector<8x1xf32>
    %126 = vector.broadcast %125 : vector<8x1xf32> to vector<8x128xf32>
    %127 = arith.addf %124, %126 : vector<8x128xf32>
    %cst_59 = arith.constant 5.000000e-01 : f32
    %128 = vector.broadcast %cst_59 : f32 to vector<8x128xf32>
    %129 = arith.mulf %128, %127 : vector<8x128xf32>
    %130 = arith.mulf %127, %127 : vector<8x128xf32>
    %131 = arith.mulf %130, %127 : vector<8x128xf32>
    %cst_60 = arith.constant 4.471500e-02 : f32
    %132 = vector.broadcast %cst_60 : f32 to vector<8x128xf32>
    %133 = arith.mulf %132, %131 : vector<8x128xf32>
    %134 = arith.addf %127, %133 : vector<8x128xf32>
    %cst_61 = arith.constant 0.797884583 : f32
    %135 = vector.broadcast %cst_61 : f32 to vector<8x128xf32>
    %136 = arith.mulf %135, %134 : vector<8x128xf32>
    %137 = math.tanh %136 : vector<8x128xf32>
    %cst_62 = arith.constant 1.000000e+00 : f32
    %138 = vector.broadcast %cst_62 : f32 to vector<8x128xf32>
    %139 = arith.addf %138, %137 : vector<8x128xf32>
    %140 = arith.mulf %129, %139 : vector<8x128xf32>
    %c0_63 = arith.constant 0 : index
    %c0_64 = arith.constant 0 : index
    %c0_65 = arith.constant 0 : index
    %141 = vector.load %arg1[%c0_63, %c0_64, %c0_65] : memref<1x8x128xf32, #tpu.memory_space<vmem>>, vector<1x8x128xf32>
    %142 = vector.shape_cast %141 : vector<1x8x128xf32> to vector<8x128xf32>
    %143 = arith.mulf %140, %142 : vector<8x128xf32>
    %c0_66 = arith.constant 0 : index
    %c0_67 = arith.constant 0 : index
    %c0_68 = arith.constant 0 : index
    %144 = vector.load %arg8[%c0_66, %c0_67, %c0_68] : memref<1x8x128xf32, #tpu.memory_space<vmem>>, vector<1x8x128xf32>
    %145 = vector.shape_cast %144 : vector<1x8x128xf32> to vector<8x128xf32>
    %146 = vector.shape_cast %143 : vector<8x128xf32> to vector<1x8x128xf32>
    tpu.vector_store %arg8[%c0_66, %c0_67, %c0_68], %146 {strides = array<i32>} : memref<1x8x128xf32, #tpu.memory_space<vmem>>, vector<1x8x128xf32>,
    return
  }
  func.func @transform_0(%arg0: i32) -> (i32, i32, i32) {
    %c0_i32 = arith.constant 0 : i32
    %c0_i32_0 = arith.constant 0 : i32
    %c0_i32_1 = arith.constant 0 : i32
    return %arg0, %c0_i32, %c0_i32_0 : i32, i32, i32
  }
  func.func @transform_1(%arg0: i32) -> (i32, i32, i32) {
    %c0_i32 = arith.constant 0 : i32
    %c0_i32_0 = arith.constant 0 : i32
    %c0_i32_1 = arith.constant 0 : i32
    %c0_i32_2 = arith.constant 0 : i32
    return %c0_i32, %c0_i32_0, %c0_i32_1 : i32, i32, i32
  }
  func.func @transform_2(%arg0: i32) -> (i32, i32) {
    %c0_i32 = arith.constant 0 : i32
    %c0_i32_0 = arith.constant 0 : i32
    %c0_i32_1 = arith.constant 0 : i32
    return %c0_i32, %c0_i32_0 : i32, i32
  }
  func.func @transform_3(%arg0: i32) -> (i32, i32, i32) {
    %c0_i32 = arith.constant 0 : i32
    %c0_i32_0 = arith.constant 0 : i32
    %c0_i32_1 = arith.constant 0 : i32
    %c0_i32_2 = arith.constant 0 : i32
    return %c0_i32, %c0_i32_0, %c0_i32_1 : i32, i32, i32
  }
  func.func @transform_4(%arg0: i32) -> (i32, i32) {
    %c0_i32 = arith.constant 0 : i32
    %c0_i32_0 = arith.constant 0 : i32
    %c0_i32_1 = arith.constant 0 : i32
    return %c0_i32, %c0_i32_0 : i32, i32
  }
  func.func @transform_5(%arg0: i32) -> (i32, i32) {
    %c0_i32 = arith.constant 0 : i32
    %c0_i32_0 = arith.constant 0 : i32
    %c0_i32_1 = arith.constant 0 : i32
    return %c0_i32, %c0_i32_0 : i32, i32
  }
  func.func @transform_6(%arg0: i32) -> (i32, i32) {
    %c0_i32 = arith.constant 0 : i32
    %c0_i32_0 = arith.constant 0 : i32
    %c0_i32_1 = arith.constant 0 : i32
    return %c0_i32, %c0_i32_0 : i32, i32
  }
  func.func @transform_7(%arg0: i32) -> (i32, i32, i32) {
    %c0_i32 = arith.constant 0 : i32
    %c0_i32_0 = arith.constant 0 : i32
    %c0_i32_1 = arith.constant 0 : i32
    return %arg0, %c0_i32, %c0_i32_0 : i32, i32, i32
  }
}

</mosaic_0001>

<bundles_post_ra>
// kernel: tpu_custom_call.1
= control target key start
LH: loop header
LB: loop body
LE: loop exit
PB: predicated region body
PF: predicated region fallthrough
CT: control target
= control target key end

     0   :  { %s1575_s0 = inlined_call_operand.hbm [shape: f32[2,8,128], index: 0, kind: input, shape index: {}]   ;;  %s1576_s1 = inlined_call_operand.vmem [shape: f32[3,8,8], index: 1, kind: input, shape index: {}]   ;;  %s1577_s2 = inlined_call_operand.vmem [shape: f32[8,1], index: 2, kind: input, shape index: {}]   ;;  %s1578_s3 = inlined_call_operand.hbm [shape: f32[3,8,8], index: 3, kind: input, shape index: {}]   ;;  %s1579_s4 = inlined_call_operand.vmem [shape: f32[8,1], index: 4, kind: input, shape index: {}]   ;;  %s1580_s5 = inlined_call_operand.vmem [shape: f32[8,8], index: 5, kind: input, shape index: {}]   ;;  %s1581_s6 = inlined_call_operand.vmem [shape: f32[8,1], index: 6, kind: input, shape index: {}]   ;;  %s1582_s7 = inlined_call_operand.hbm [shape: f32[2,8,128], index: 7, kind: output, shape index: {}]  }
   0x1   :  { %1587 = sst [smem:[#allocation12_spill]] %s1578_s3 }
   0x2   :  { %12 = vsyncpa [#allocation3], 0 }
   0x3   :  { %14 = vsyncpa [#allocation3 + $0x1], 0 }
   0x4   :  { %15 = vsyncpa [#allocation6], 0 }
   0x5   :  { %16 = vsyncpa [#allocation4], 0 }
   0x6   :  { %18 = vsyncpa [#allocation4 + $0x1], 0  ;;  %s1349_s24 = smov 0   ;;  %s1351_s25 = smov 0  }
   0x7   :  { %s1353_s26 = smov 0   ;;  %s1355_s27 = smov 0  }
   0x8 LB: > { %s1370_s28 = sadd.s32 4294967295, %s1295_s27   ;;  %s1021_s29 = sadd.s32 4294967294, %s1295_s27   ;;  %s1295_s27 = sphi %s1355_s27, %s1608_s27   ;;  %s1291_s26 = sphi %s1353_s26, %s1607_s26   ;;  %s1287_s25 = sphi %s1351_s25, %s1606_s25   ;;  %s1283_s24 = sphi %s1349_s24, %s1605_s24  }
   0x9   : > { %p44_p0 = scmp.ne.s32.totalorder %s1287_s25, %s1283_s24  ;;  %p1583_p1 = scmp.eq.s32.totalorder %s1370_s28, 0 }
   0xa   : > { %p200_p3 = scmp.eq.s32.totalorder %s1021_s29, 1  ;;  %p1022_p5 = scmp.ge.s32.totalorder %s1295_s27, 1 }
   0xb   : > { %p1379_p4 = por %p1583_p1, %p44_p0  ;;  %p207_p7 = scmp.lt.s32.totalorder %s1295_s27, 3 }
   0xc   : > { %p1384_p6 = por %p200_p3, %p44_p0  ;;  %s1297_s10 = smov [#allocation5]  }
   0xd   : > { %s1588_s30 = scalar_select %p1379_p4, 1, 0 }
   0xe   : > { %s1589_s8 = scalar_select %p1384_p6, 1, 0 }
   0xf   : > { %p1389_p8 = pnand %p1022_p5, %p207_p7  ;;  %s225_s11 = sshll.u32 %s1297_s10, 4  ;;  %s226_s11 = int_to_ptr.vmem [resolvable:$true] %s225_s11 }
  0x10   : > { %s1403_s13 = sadd.s32 1, %s1295_s27   ;;  %s31_s14 = sadd.s32 1, %s1291_s26 }
  0x11   : > { %s1590_s9 = scalar_select %p1389_p8, 1, 0 }
  0x12   : > { %p1107_p9 = pneg %p1389_p8  ;;  %s28_s15 = ssub.s32 %s1295_s27, %s1403_s13 }
  0x13   : > { %s1184_s16 = scalar_lea.vmem %s226_s11, 384  ;;  %p1192_p5 = scmp.lt.s32.totalorder %s226_s11, %s226_s11 }
  0x14   : > { %p1398_p11 = pnand %p1107_p9, %p1583_p1  ;;  %p1185_p13 = scmp.ne.s32.totalorder %s226_s11, %s1184_s16 }
  0x15   : > { %p1193_p7 = scmp.lt.s32.totalorder %s1184_s16, %s1184_s16 }
  0x16   : > { %p1175_p12 = pneg %p1398_p11 }
  0x17   : > { %p1194_p10 = por %p1193_p7, %p1192_p5 }
  0x18   : > { %p1187_p0 = pnand %p1185_p13, %p1175_p12 }
  0x1a   : > { %p1188_p3 = pneg %p1187_p0 }
  0x1c   : > { %p1195_p2 = pnand %p1194_p10, %p1188_p3 }
  0x1e   : > { %1198 = shalt.err (!%p1195_p2)
}
  0x1f   : > { %s1298_s17 = smov 128   ;;  %s1299_s18 = smov 8  }
  0x20   : > { %s1592_s3 = sld [smem:[#allocation12_spill]]  ;;  %p29_p9 = scmp.eq.s32.totalorder %s28_s15, 0 }
  0x21   : > { %p38_p12 = scmp.ne.s32.totalorder %s1291_s26, %s1287_s25  ;;  %p39_p10 = scmp.eq.s32.totalorder %s1295_s27, 0 }
  0x22   : > { %p1120_p2 = scmp.lt.s32.totalorder %s1295_s27, 2  ;;  %p1594_p0 = scmp.eq.s32.totalorder %s1370_s28, 1 }
  0x23   : > { %s1420_s21 = scalar_select %p29_p9, %s1291_s26, %s31_s14  }
  0x24   : > { %p40_p13 = por %p39_p10, %p38_p12  ;;  %p1424_p3 = por %p1594_p0, %p38_p12 }
  0x25   : > { %1593 = sst [smem:[#allocation11_spill]] %s1420_s21  ;;  %s248_s23 = sand.u32 1, %s1291_s26  }
  0x26   : > { %1110 = dma.hbm_to_vmem [thread:$0]  (!%p1398_p11), %s1592_s3, 384, %s226_s11, [#allocation6], %s1298_s17, %s1298_s17, %s1299_s18  }
  0x27   : > { %s1595_s22 = scalar_select %p1424_p3, 1, 0 }
  0x28   : > { %s1026_s29 = sshll.u32 %s1295_s27, 7  ;;  %s1025_s10 = sshll.u32 %s248_s23, 3 }
  0x29   : > { %s1433_s19 = scalar_lea.hbm %s1575_s0, %s1026_s29  ;;  %s252_s11 = scalar_lea.vmem [#allocation2], %s1025_s10 }
  0x2a   : > { %s259_s14 = sshll.u32 %s252_s11, 4  ;;  %p1435_p11 = pnand %p1120_p2, %p40_p13  ;;  %s260_s14 = int_to_ptr.vmem [resolvable:$true] %s259_s14 }
  0x2b   : > { %s249_s17 = scalar_lea.sflag [#allocation3], %s248_s23  ;;  %s1199_s18 = scalar_lea.hbm %s1433_s19, 128 }
  0x2c   : > { %p1200_p5 = scmp.ne.s32.totalorder %s1433_s19, %s1199_s18  ;;  %p1201_p7 = pneg %p1435_p11 }
  0x2d   : > { %s1204_s12 = scalar_lea.hbm %s1575_s0, 256  ;;  %p1205_p10 = scmp.lt.s32.totalorder %s1433_s19, %s1575_s0 }
  0x2e   : > { %p1202_p9 = pnand %p1201_p7, %p1200_p5  ;;  %p1206_p2 = scmp.lt.s32.totalorder %s1204_s12, %s1199_s18 }
  0x30   : > { %p1203_p12 = pneg %p1202_p9  ;;  %p1207_p13 = por %p1206_p2, %p1205_p10 }
  0x32   : > { %p1208_p0 = pnand %p1207_p13, %p1203_p12 }
  0x34   : > { %1211 = shalt.err (!%p1208_p0)
}
  0x35   : > { %s1212_s11 = scalar_lea.vmem %s260_s14, 128  ;;  %s1300_s23 = smov [#allocation2]  }
  0x36   : > { %p1213_p1 = scmp.ne.s32.totalorder %s260_s14, %s1212_s11  ;;  %s1217_s3 = sshll.u32 %s1300_s23, 4  ;;  %s1218_s3 = int_to_ptr.vmem [resolvable:$false] %s1217_s3 }
  0x37   : > { %s1219_s21 = scalar_lea.vmem %s1218_s3, 256  ;;  %p1220_p5 = scmp.lt.s32.totalorder %s260_s14, %s1218_s3 }
  0x38   : > { %p1215_p6 = pnand %p1213_p1, %p1201_p7  ;;  %p1221_p9 = scmp.lt.s32.totalorder %s1219_s21, %s1212_s11 }
  0x3a   : > { %p1216_p3 = pneg %p1215_p6  ;;  %p1222_p4 = por %p1221_p9, %p1220_p5 }
  0x3c   : > { %p1223_p8 = pnand %p1222_p4, %p1216_p3 }
  0x3e   : > { %1226 = shalt.err (!%p1223_p8)
}
  0x3f   : > { %1114 = dma.hbm_to_vmem [thread:$0]  (!%p1435_p11), %s1433_s19, 128, %s260_s14, %s249_s17  }
  0x40   : > { %p1597_p12 = scmp.ne.s32.totalorder %s1590_s9, 0 }
  0x41   : > { %s1456_s18 = sand.u32 (!%p1597_p12), 1, %s1287_s25   ;;  %p1598_p1 = scmp.ne.s32.totalorder (!%p1597_p12), %s1588_s30, 0 }
  0x42   : > { %268 = sbr.rel (%p1597_p12) target bundleno = 1007 (0x3ef), region = 48  ;;  %s1028_s20 = sshll.u32 (!%p1597_p12), %s1456_s18, 3 }
  0x43   : > { %s271_s3 = scalar_lea.sflag (!%p1597_p12), [#allocation3], %s1456_s18  ;;  %s274_s21 = scalar_lea.vmem (!%p1597_p12), [#allocation2], %s1028_s20 }
  0x47   : > { %1270 = dma.done.wait (%p1598_p1), %s271_s3, 128  }
  0x48   : > { %1272 = vsyncadd (%p1598_p1), %s271_s3, 4294967168  ;;  %p1599_p4 = scmp.eq.s32.totalorder %s1370_s28, 0 }
  0x4a   : > { %1274 = dma.done.wait (%p1599_p4), [#allocation6], 384   ;;  %p1600_p6 = pmov %p1599_p4 }
  0x4b   : > { %v1301_v0 = vmov 0.0   ;;  %vm1302_vm0 = vmmov 0   ;;  %v1303_v1 = vmov 0   ;;  %vm337_vm1 = vcmask 64512   ;;  %v1476_v2 = vld [vmem:[%s274_s21] sm:$0xff]  ;;  %s1304_s19 = smov 127  }
  0x4c   : > { %1276 = vsyncadd (%p1600_p6), [#allocation6], 4294966912  ;;  %1064 = vmatprep.subr.mxu0 %v1301_v0  ;;  %1066 = vmatprep.mubr.msk.f32.mxu0 %vm1302_vm0, %v1301_v0  ;;  %v1031_v3 = vld [vmem:[%s1576_s1 + $0x8] sm:$0xff]  ;;  %v565_v4 = vld [vmem:[%s1577_s2] sm:$0xff]  ;;  %s1305_s17 = smov 1   ;;  %v309_v5 = vlaneseq  ;;  %s1306_s11 = smov 6  }
  0x4d   : > { %1069 = vmatprep.subr.mxu1 %v1301_v0  ;;  %1071 = vmatprep.mubr.msk.f32.mxu1 %vm1302_vm0, %v1301_v0  ;;  %v334_v9 = vld [vmem:[%s1576_s1] sm:$0xff]  ;;  %v1035_v11 = vld [vmem:[%s1576_s1 + $0x10] sm:$0xff]  ;;  %v591_v32 = vld [vmem:[#allocation5 + $0x8] sm:$0xff]  ;;  %s1307_s23 = smov 122   ;;  %s1047_s15 = sshll.u32 %s1370_s28, 7 }
  0x4e   : > { %1165 = vset.pattern.permute.xlu1 %v1303_v1  ;;  %1166 = vset.pattern.permute.xlu0 %v1303_v1  ;;  %v1491_v6 = vand.u32 127, %v309_v5  ;;  %v819_v34 = vld [vmem:[%s1579_s4] sm:$0xff]  ;;  %v589_v37 = vld [vmem:[#allocation5] sm:$0xff]  ;;  %s939_s10 = scalar_lea.hbm %s1582_s7, %s1047_s15  ;;  %p1601_p3 = scmp.ne.s32.totalorder %s1595_s22, 0 }
  0x4f   : > { %329 = vrot.lane.b32.xlu0 %v1476_v2, %s1304_s19  ;;  %1065 = vmatpush3.msra.mxu0 %v1476_v2  ;;  %v744_v38 = vld [vmem:[#allocation5 + $0x10] sm:$0xff]  ;;  %s1308_s3 = smov [#allocation7]  }
  0x50   : > { %1067 = vmatmul.mubr.msk.f32.vlgmr.msra.gmra.mxu0 %vm337_vm1, %v1031_v3  ;;  %1074 = vmatprep.subr.mxu0 %v1301_v0  ;;  %v319_v7 = vadd.s32 1, %v1491_v6  ;;  %v315_v8 = vadd.s32 4294967295, %v1491_v6  ;;  %vm327_vm6 = vcmp.lt.s32.totalorder %v1491_v6, 16  ;;  %v311_v35 = vadd.s32 4294967290, %v1491_v6  ;;  %v837_v43 = vld [vmem:[%s1581_s6] sm:$0xff]  ;;  %s1231_s28 = sshll.u32 %s1308_s3, 4  ;;  %s1232_s28 = int_to_ptr.vmem [resolvable:$false] %s1231_s28 }
  0x51   : > { %1076 = vmatprep.mubr.msk.f32.mxu0 %vm1302_vm0, %v1301_v0  ;;  %568 = vperm.xlu1 %1165, %v565_v4   ;;  %v323_v36 = vadd.s32 6, %v1491_v6  ;;  %v836_v61 = vld [vmem:[%s1580_s5] sm:$0xff] }
  0x52   : > { %vm321_vm2 = vcmp.lt.s32.totalorder %v319_v7, 16  ;;  %vm316_vm3 = vcmp.ge.s32.totalorder %v315_v8, 0  ;;  %vm317_vm4 = vcmp.lt.s32.totalorder %v315_v8, 16  ;;  %vm312_vm7 = vcmp.ge.s32.totalorder %v311_v35, 0 }
  0x53   : > { %484 = vrot.lane.b32.xlu0 %v1476_v2, %s1305_s17  ;;  %vm318_vm5 = vmand %vm316_vm3, %vm317_vm4  ;;  %vm313_vm8 = vcmp.lt.s32.totalorder %v311_v35, 16  ;;  %vm325_vm9 = vcmp.lt.s32.totalorder %v323_v36, 16  ;;  %s308_s17 = scalar_lea.vmem [#allocation7], %s1028_s20  ;;  %s1233_s20 = scalar_lea.vmem %s1232_s28, 256 }
  0x54   : > { %vm314_vm10 = vmand %vm312_vm7, %vm313_vm8  ;;  %s941_s29 = sshll.u32 %s308_s17, 4  ;;  %s942_s29 = int_to_ptr.vmem [resolvable:$true] %s941_s29 }
  0x55   : > { %p1234_p10 = scmp.lt.s32.totalorder %s942_s29, %s1232_s28 }
  0xc1   : > { %v330_v10 = vpop.permute.xlu0 %329 }
  0xc2   : > { %1070 = vmatpush3.msk.msra.mxu1 %vm321_vm2, %v330_v10 }
  0xc3   : > { %1072 = vmatmul.mubr.msk.f32.vlgmr.msra.gmra.mxu1 %vm337_vm1, %v334_v9  ;;  %1079 = vmatprep.subr.mxu1 %v1301_v0 }
  0xc4   : > { %1081 = vmatprep.mubr.msk.f32.mxu1 %vm1302_vm0, %v1301_v0 }
  0xc5   : > { %v485_v12 = vpop.permute.xlu0 %484 }
  0xc6   : > { %1075 = vmatpush3.msk.msra.mxu0 %vm318_vm5, %v485_v12 }
  0xc7   : > { %1077 = vmatmul.mubr.msk.f32.vlgmr.msra.gmra.mxu0 %vm337_vm1, %v1035_v11  ;;  %1084 = vmatprep.subr.mxu0 %v1301_v0 }
  0xc8   : > { %1086 = vmatprep.mubr.msk.f32.mxu0 %vm1302_vm0, %v1301_v0 }
  0xcc   : > { %v569_v19 = vpop.permute.xlu1 %568 }
 0x110   : > { %v407_v13 = vpop.f32.mrf.mxu0 }
 0x112   : > { %v1068_v14 = vpop.f32.mrf.mxu0 }
 0x183   : > { %v480_v15 = vpop.f32.mrf.mxu1 }
 0x184   : > { %v481_v17 = vadd.f32 %v480_v15, %v407_v13 }
 0x185   : > { %v1073_v16 = vpop.f32.mrf.mxu1 }
 0x187   : > { %v560_v18 = vpop.f32.mrf.mxu0 }
 0x188   : > { %v564_v20 = vadd.f32 %v560_v18, %v481_v17 }
 0x189   : > { %v1078_v21 = vpop.f32.mrf.mxu0 }
 0x18a   : > { %v571_v22 = vadd.f32 %v569_v19, %v564_v20 }
 0x18c   : > { %v573_v23 = vmul.f32 %v571_v22, %v571_v22  ;;  %v572_v29 = vmul.f32 0.5, %v571_v22 }
 0x18e   : > { %v574_v24 = vmul.f32 %v573_v23, %v571_v22 }
 0x190   : > { %v575_v25 = vmul.f32 0.044715, %v574_v24 }
 0x192   : > { %v576_v26 = vadd.f32 %v575_v25, %v571_v22 }
 0x194   : > { %v577_v27 = vmul.f32 0.7978846, %v576_v26 }
 0x196   : > { %1167 = vtanh.f32 %v577_v27 }
 0x1a3   : > { %v1168_v28 = vpop.eup %1167 }
 0x1a4   : > { %v579_v30 = vadd.f32 1.0, %v1168_v28 }
 0x1a6   : > { %v580_v31 = vmul.f32 %v579_v30, %v572_v29 }
 0x1a8   : > { %1080 = vmatpush3.msk.msra.mxu1 %vm327_vm6, %v580_v31  ;;  %v583_v33 = vsel %vm327_vm6, %v580_v31, 0.0 }
 0x1a9   : > { %738 = vrot.lane.b32.xlu0 %v583_v33, %s1306_s11  ;;  %584 = vrot.lane.b32.xlu1 %v583_v33, %s1307_s23  ;;  %s928_s11 = scalar_lea.sflag [#allocation4], %s1456_s18  ;;  %s1227_s23 = scalar_lea.vmem %s942_s29, 128 }
 0x1aa   : > { %1082 = vmatmul.mubr.msk.f32.vlgmr.msra.gmra.mxu1 %vm337_vm1, %v591_v32  ;;  %1089 = vmatprep.subr.mxu1 %v1301_v0  ;;  %p1228_p8 = scmp.ne.s32.totalorder %s942_s29, %s1227_s23  ;;  %p1235_p2 = scmp.lt.s32.totalorder %s1233_s20, %s1227_s23 }
 0x1ab   : > { %1091 = vmatprep.mubr.msk.f32.mxu1 %vm1302_vm0, %v1301_v0 }
 0x1ac   : > { %p1229_p11 = pnand %p1228_p8, %p1601_p3  ;;  %p1236_p13 = por %p1235_p2, %p1234_p10 }
 0x1ad   : > { %822 = vperm.xlu1 %1165, %v819_v34   ;;  %840 = vperm.xlu0 %1166, %v837_v43  }
 0x1ae   : > { %p1230_p7 = pneg %p1229_p11 }
 0x1b0   : > { %p1237_p0 = pnand %p1236_p13, %p1230_p7 }
 0x21b   : > { %v739_v39 = vpop.permute.xlu0 %738  ;;  %v585_v40 = vpop.permute.xlu1 %584 }
 0x21c   : > { %1085 = vmatpush3.msk.msra.mxu0 %vm325_vm9, %v585_v40  ;;  %1090 = vmatpush3.msk.msra.mxu1 %vm314_vm10, %v739_v39 }
 0x21d   : > { %1087 = vmatmul.mubr.msk.f32.vlgmr.msra.gmra.mxu0 %vm337_vm1, %v589_v37  ;;  %1092 = vmatmul.mubr.msk.f32.vlgmr.msra.gmra.mxu1 %vm337_vm1, %v744_v38 }
 0x21e   : > { %1094 = vmatprep.subr.mxu0 %v1301_v0  ;;  %1096 = vmatprep.mubr.msk.f32.mxu0 %vm1302_vm0, %v1301_v0 }
 0x228   : > { %v823_v50 = vpop.permute.xlu1 %822  ;;  %v841_v62 = vpop.permute.xlu0 %840 }
 0x26a   : > { %v661_v41 = vpop.f32.mrf.mxu1 }
 0x26c   : > { %v1083_v42 = vpop.f32.mrf.mxu1 }
 0x2dd   : > { %v734_v44 = vpop.f32.mrf.mxu0  ;;  %v814_v45 = vpop.f32.mrf.mxu1 }
 0x2de   : > { %v735_v46 = vadd.f32 %v734_v44, %v661_v41 }
 0x2df   : > { %v1088_v47 = vpop.f32.mrf.mxu0  ;;  %v1093_v48 = vpop.f32.mrf.mxu1 }
 0x2e0   : > { %v818_v49 = vadd.f32 %v814_v45, %v735_v46 }
 0x2e2   : > { %v825_v51 = vadd.f32 %v823_v50, %v818_v49 }
 0x2e4   : > { %v827_v52 = vmul.f32 %v825_v51, %v825_v51  ;;  %v826_v58 = vmul.f32 0.5, %v825_v51 }
 0x2e6   : > { %v828_v53 = vmul.f32 %v827_v52, %v825_v51 }
 0x2e8   : > { %v829_v54 = vmul.f32 0.044715, %v828_v53 }
 0x2ea   : > { %v830_v55 = vadd.f32 %v829_v54, %v825_v51 }
 0x2ec   : > { %v831_v56 = vmul.f32 0.7978846, %v830_v55 }
 0x2ee   : > { %1169 = vtanh.f32 %v831_v56 }
 0x2fb   : > { %v1170_v57 = vpop.eup %1169 }
 0x2fc   : > { %v833_v59 = vadd.f32 1.0, %v1170_v57 }
 0x2fe   : > { %v834_v60 = vmul.f32 %v833_v59, %v826_v58 }
 0x300   : > { %1095 = vmatpush3.msk.msra.mxu0 %vm327_vm6, %v834_v60 }
 0x301   : > { %1097 = vmatmul.mubr.msk.f32.vlgmr.msra.gmra.mxu0 %vm337_vm1, %v836_v61 }
 0x3c1   : > { %v912_v63 = vpop.f32.mrf.mxu0 }
 0x3c2   : > { %v913_v0 = vadd.f32 %v912_v63, %v841_v62 }
 0x3c3   : > { %v1098_v1 = vpop.f32.mrf.mxu0 }
 0x3c4   : > { %v917_v3 = vmul.f32 %v913_v0, %v913_v0  ;;  %v916_v10 = vmul.f32 0.5, %v913_v0 }
 0x3c6   : > { %v918_v4 = vmul.f32 %v917_v3, %v913_v0 }
 0x3c8   : > { %v919_v5 = vmul.f32 0.044715, %v918_v4 }
 0x3ca   : > { %v920_v7 = vadd.f32 %v919_v5, %v913_v0 }
 0x3cc   : > { %v921_v8 = vmul.f32 0.7978846, %v920_v7 }
 0x3ce   : > { %1171 = vtanh.f32 %v921_v8 }
 0x3db   : > { %v1172_v9 = vpop.eup %1171 }
 0x3dc   : > { %v923_v6 = vadd.f32 1.0, %v1172_v9 }
 0x3de   : > { %v924_v11 = vmul.f32 %v923_v6, %v916_v10 }
 0x3e0   : > { %v925_v12 = vmul.f32 %v924_v11, %v1476_v2 }
 0x3e2   : > { %926 = vst [vmem:[%s308_s17] sm:$0xff] %v925_v12 }
 0x3e3   : > { %1240 = shalt.err (!%p1237_p0)
}
 0x3e4   : > { %s1241_s21 = scalar_lea.hbm %s939_s10, 128  ;;  %s1245_s9 = scalar_lea.hbm %s1582_s7, 256 }
 0x3e5   : > { %p1242_p5 = scmp.ne.s32.totalorder %s939_s10, %s1241_s21  ;;  %p1246_p1 = scmp.lt.s32.totalorder %s939_s10, %s1582_s7 }
 0x3e6   : > { %p1247_p4 = scmp.lt.s32.totalorder %s1245_s9, %s1241_s21 }
 0x3e7   : > { %p1243_p9 = pnand %p1242_p5, %p1601_p3 }
 0x3e8   : > { %p1248_p6 = por %p1247_p4, %p1246_p1 }
 0x3e9   : > { %p1244_p12 = pneg %p1243_p9 }
 0x3eb   : > { %p1249_p8 = pnand %p1248_p6, %p1244_p12 }
 0x3ed   : > { %1252 = shalt.err (!%p1249_p8)
}
 0x3ee   : > { %1105 = dma.vmem_to_hbm [thread:$0]  (%p1601_p3), %s942_s29, 128, %s939_s10, %s928_s11  }
 0x3ef PF: > { %s953_s15 = sand.u32 1, %s1283_s24   ;;  %p1602_p11 = scmp.ne.s32.totalorder %s1589_s8, 0 }
 0x3f0   : > { %p1603_p7 = scmp.ge.s32.totalorder %s1295_s27, 2  ;;  %s954_s17 = scalar_lea.sflag [#allocation4], %s953_s15 }
 0x3f2   : > { %p1116_p10 = pnand %p1603_p7, %p1602_p11 }
 0x3f4   : > { %p1117_p2 = pneg %p1116_p10 }
 0x3f6   : > { %1278 = dma.done.wait (%p1117_p2), %s954_s17, 128  }
 0x3f7   : > { %1280 = vsyncadd (%p1117_p2), %s954_s17, 4294967168  ;;  %s1604_s12 = sld [smem:[#allocation11_spill]]  ;;  %p21_p13 = scmp.ge.s32.totalorder %s1403_s13, 4  }
 0x3f8   : > { %s1605_s24 = smov %s1287_s25  ;;  %s1606_s25 = smov %s1291_s26 }
 0x3f9   : > { %s1608_s27 = smov %s1403_s13  ;;  %23 = sbr.rel (!%p21_p13) target bundleno = 8 (0x8), region = 101 }
 0x3fd   : > { %s1607_s26 = smov %s1604_s12 }
 0x3fe   :  { %959 = vsyncpa [#allocation3], 1 }
 0x3ff   :  { %961 = vsyncpa [#allocation3 + $0x1], 1 }
 0x400   :  { %962 = vsyncpa [#allocation6], 1 }
 0x401   :  { %963 = vsyncpa [#allocation4], 1 }
 0x402   :  { %965 = vsyncpa [#allocation4 + $0x1], 1 }

</bundles_post_ra>
